<compile_context>
chip_gen: v7x
topology: tpu7x:2x2x1
jax: 0.10.0
libtpu: 0.0.40
codegen_flags: <defaults>
</compile_context>

<pallas_src>
import jax
import jax.numpy as jnp
import numpy as np
from jax.experimental import pallas as pl
from jax.experimental.pallas import tpu as pltpu

_EPS = 1e-5  # nn.BatchNorm2d default

# torch cat order [yL, yH0, yH1, yH2] expressed over the Haar phase samples
# (a,b,c,d) = x[::2,::2], x[::2,1::2], x[1::2,::2], x[1::2,1::2]; the 0.5 is
# the Haar analysis gain.
_HAAR = 0.5 * np.array([[1,  1,  1,  1],
                        [1,  1, -1, -1],
                        [1, -1,  1, -1],
                        [1, -1, -1,  1]], np.float32)


def down_wt_kernel(p_ref, scale_ref, shift_ref, w_ref, bias_ref, o_ref):
    """One lane-tile of N*H2*W2 output pixels.

    p_ref    : (4, C, ts)       Haar phase samples a,b,c,d (pixels on lanes)
    scale_ref: (4, C, 1)  f32   folded BN scale  (0.5 * gamma * rsqrt(var+eps))
    shift_ref: (4, C, 1)  f32   folded BN shift  (beta - mean*gamma*rsqrt(var+eps))
    w_ref    : (4, out_pad, C)  1x1-conv weight split per subband
    bias_ref : (out_pad, 1) f32
    o_ref    : (out_pad, ts) f32
    """
    a = p_ref[0].astype(jnp.float32)
    b = p_ref[1].astype(jnp.float32)
    c = p_ref[2].astype(jnp.float32)
    d = p_ref[3].astype(jnp.float32)

    # Haar J=1, mode='zero' butterfly (even spatial dims => padding unused);
    # the 1/2 analysis gain is folded into `scale` by the wrapper.
    ab, cd = a + b, c + d
    amb, cmd = a - b, c - d
    subbands = (ab + cd,      # yL          (torch cat slot 0)
                ab - cd,      # yH[..., 0]  (slot 1)
                amb + cmd,    # yH[..., 1]  (slot 2)
                amb - cmd)    # yH[..., 2]  (slot 3)

    # BatchNorm (folded to one per-channel FMA) + ReLU + per-subband
    # accumulating 1x1 matmul.  No concatenate -> no sublane relayout.
    acc = None
    for i in range(4):
        y = jnp.maximum(subbands[i] * scale_ref[i] + shift_ref[i], 0.0)
        part = jnp.dot(w_ref[i], y.astype(w_ref.dtype),
                       preferred_element_type=jnp.float32)
        acc = part if acc is None else acc + part
    o_ref[...] = (acc + bias_ref[...]).astype(o_ref.dtype)


def _round_up(x, m):
    return (x + m - 1) // m * m


def _step_vmem_bytes(C, out_pad, ts, in_bytes):
    """Approximate per-grid-step VMEM: double-buffered I/O blocks + f32 temps."""
    in_blk = 4 * C * ts * in_bytes       # phases tile
    out_blk = out_pad * ts * 4           # output tile
    interm = 6 * C * ts * 4              # butterfly / BN f32 temporaries
    return 2 * in_blk + 2 * out_blk + interm


def _vmem_capacity_bytes():
    try:
        info = pltpu.get_tpu_info()
        cap = getattr(info, "vmem_capacity_bytes", None)
        if cap:
            return int(cap)
    except Exception:
        pass
    return 64 * 1024 * 1024              # v7x per-TC size: safe lower bound


def down_wt_forward(x, gamma, beta, w_t, bias, *, compute_dtype=jnp.float32):
    """x: (N, C, H, W) f32 NCHW.  gamma/beta: (4C,).  w_t: (out_ch, 4C)
    (torch Conv2d 1x1 weight squeezed).  bias: (out_ch,).
    Returns (N, out_ch, H/2, W/2) f32."""
    N, C, H, W = x.shape
    assert H % 2 == 0 and W % 2 == 0, "Haar J=1 expects even spatial dims"
    H2, W2 = H // 2, W // 2
    S = H2 * W2
    P = N * S                                    # flattened pixel (lane) axis
    out_ch = w_t.shape[0]
    out_pad = _round_up(out_ch, 8)               # sublane-aligned conv output
    # (Keeping out_ch a multiple of 8 at the model level avoids the small
    #  out[:out_ch] copy at the end; it is minor vs. input traffic.)

    # ---- phase extraction, batch folded into the pixel/lane axis:
    # phases[p, c, n*S + h2*W2 + w2] = x[n, c, 2*h2 + (p>>1), 2*w2 + (p&1)].
    # One strided read of x + one contiguous write; no other x-sized temps.
    ph = jnp.stack([x[:, :, 0::2, 0::2], x[:, :, 0::2, 1::2],
                    x[:, :, 1::2, 0::2], x[:, :, 1::2, 1::2]], axis=0)
    phases = ph.transpose(0, 2, 1, 3, 4).reshape(4, C, P).astype(jnp.float32)
    # TODO(synk): evaluate reading x directly and deinterleaving in-kernel
    # (strided pl.ds / pltpu.roll) to drop this materialization entirely.

    # ---- full-batch BN statistics (training-mode, biased variance) without
    # materializing subbands: per-channel first moments + a 4x4 phase Gram,
    # contracted with the Haar butterfly.  Single fused read of `phases`.
    hm = jnp.asarray(_HAAR)                                     # (4, 4)
    mean_ph = jnp.mean(phases, axis=-1)                         # (4, C)
    gram = jnp.einsum('pcx,qcx->pqc', phases, phases,
                      preferred_element_type=jnp.float32) / P   # (4, 4, C)
    mean_s = jnp.einsum('kp,pc->kc', hm, mean_ph)               # (4, C)
    ex2_s = jnp.einsum('kp,pqc,kq->kc', hm, gram, hm)           # (4, C)
    # E[s^2]-E[s]^2 in f32: clamp tiny negative cancellation residue.
    var_s = jnp.maximum(ex2_s - mean_s * mean_s, 0.0)
    inv_std = jax.lax.rsqrt(var_s + _EPS)
    g4 = gamma.reshape(4, C).astype(jnp.float32)
    be4 = beta.reshape(4, C).astype(jnp.float32)
    scale = (0.5 * g4 * inv_std)[..., None]                     # (4, C, 1)
    shift = (be4 - mean_s * g4 * inv_std)[..., None]            # (4, C, 1)

    # ---- 1x1 conv params: pad out_ch to a sublane multiple and split the 4C
    # contraction into per-subband (out_pad, C) slabs (no in-kernel concat).
    w_pad = jnp.zeros((out_pad, 4 * C), jnp.float32).at[:out_ch].set(
        w_t.astype(jnp.float32))
    w_pack = w_pad.reshape(out_pad, 4, C).transpose(1, 0, 2)    # (4, out_pad, C)
    bias_pad = jnp.zeros((out_pad, 1), jnp.float32).at[:out_ch, 0].set(
        bias.astype(jnp.float32))

    # ---- VMEM-budget-aware lane-tile selection (v7x: 64 MiB/TC; v5e/v6e: 128).
    in_bytes = np.dtype(compute_dtype).itemsize
    vmem_cap = _vmem_capacity_bytes()
    budget = int(vmem_cap * 0.45)                # headroom for compiler scratch
    ts_budget = 128
    while (ts_budget < 8192 and
           _step_vmem_bytes(C, out_pad, 2 * ts_budget, in_bytes) <= budget):
        ts_budget *= 2
    n_steps = -(-P // ts_budget)
    ts = _round_up(-(-P // n_steps), 128)        # lane-dense, evenly split
    P_pad = n_steps * ts

    phases = phases.astype(compute_dtype)
    if P_pad != P:
        phases = jnp.zeros((4, C, P_pad), compute_dtype).at[:, :, :P].set(phases)
    w_pack = w_pack.astype(compute_dtype)

    vmem_limit = int(min(vmem_cap * 3 // 4,
                         max(32 << 20,
                             _step_vmem_bytes(C, out_pad, ts, in_bytes)
                             + (8 << 20))))

    out = pl.pallas_call(
        down_wt_kernel,
        out_shape=jax.ShapeDtypeStruct((out_pad, P_pad), jnp.float32),
        grid=(n_steps,),
        in_specs=[
            pl.BlockSpec((4, C, ts), lambda i: (0, 0, i)),
            pl.BlockSpec((4, C, 1), lambda i: (0, 0, 0)),
            pl.BlockSpec((4, C, 1), lambda i: (0, 0, 0)),
            pl.BlockSpec((4, out_pad, C), lambda i: (0, 0, 0)),
            pl.BlockSpec((out_pad, 1), lambda i: (0, 0)),
        ],
        out_specs=pl.BlockSpec((out_pad, ts), lambda i: (0, i)),
        compiler_params=pltpu.CompilerParams(
            dimension_semantics=("parallel",),
            vmem_limit_bytes=vmem_limit,
        ),
    )(phases, scale, shift, w_pack, bias_pad)

    # (out_pad, N*S) -> (N, out_ch, H2, W2).  XLA fuses slice+reshape+transpose
    # into one output-sized copy (small relative to the input traffic).
    return jnp.transpose(out[:out_ch, :P].reshape(out_ch, N, H2, W2),
                         (1, 0, 2, 3))


def down_wt_ref(x, gamma, beta, w_t, bias):
    """Pure-JAX reference of the PyTorch forward (training-mode BN)."""
    a = x[:, :, 0::2, 0::2]
    b = x[:, :, 0::2, 1::2]
    c = x[:, :, 1::2, 0::2]
    d = x[:, :, 1::2, 1::2]
    yL = (a + b + c + d) * 0.5
    y0 = (a + b - c - d) * 0.5
    y1 = (a - b + c - d) * 0.5
    y2 = (a - b - c + d) * 0.5
    cat = jnp.concatenate([yL, y0, y1, y2], axis=1)          # (N, 4C, H2, W2)
    mean = jnp.mean(cat, axis=(0, 2, 3), keepdims=True)
    var = jnp.mean((cat - mean) ** 2, axis=(0, 2, 3), keepdims=True)
    xhat = (cat - mean) / jnp.sqrt(var + _EPS)
    y = xhat * gamma[None, :, None, None] + beta[None, :, None, None]
    y = jnp.maximum(y, 0.0)
    return jnp.einsum('nchw,oc->nohw', y, w_t) + bias[None, :, None, None]


if __name__ == "__main__":
    N, in_ch, H, W = 2, 4, 16, 16
    out_ch = 8

    key = jax.random.PRNGKey(0)
    kx, kw, kb, kg, kbe = jax.random.split(key, 5)
    x = jax.random.normal(kx, (N, in_ch, H, W), jnp.float32)

    gamma = 1.0 + 0.1 * jax.random.normal(kg, (4 * in_ch,), jnp.float32)
    beta = 0.1 * jax.random.normal(kbe, (4 * in_ch,), jnp.float32)
    w_t = jax.random.normal(kw, (out_ch, 4 * in_ch), jnp.float32) * 0.1
    bias = jax.random.normal(kb, (out_ch,), jnp.float32) * 0.1

    fwd = jax.jit(down_wt_forward)
    out = jax.block_until_ready(fwd(x, gamma, beta, w_t, bias))
    assert out.shape == (N, out_ch, H // 2, W // 2)

    ref = jax.block_until_ready(down_wt_ref(x, gamma, beta, w_t, bias))
    np.testing.assert_allclose(np.asarray(out), np.asarray(ref),
                               rtol=2e-3, atol=2e-3)
    print("KERNEL_OK")
</pallas_src>

<mosaic_0001>
module attributes {stable_mosaic.version = 11 : i64} {
  func.func @down_wt_kernel(%arg0: i32, %arg1: memref<4x4x128xf32, #tpu.memory_space<vmem>>, %arg2: memref<4x4x1xf32, #tpu.memory_space<vmem>>, %arg3: memref<4x4x1xf32, #tpu.memory_space<vmem>>, %arg4: memref<4x8x4xf32, #tpu.memory_space<vmem>>, %arg5: memref<8x1xf32, #tpu.memory_space<vmem>>, %arg6: memref<8x128xf32, #tpu.memory_space<vmem>>) attributes {dimension_semantics = [#tpu.dimension_semantics<parallel>], iteration_bounds = array<i64: 1>, scalar_prefetch = 0 : i64, scratch_operands = 0 : i64, tpu.core_type = #tpu.core_type<tc>, window_params = [{transform_indices = @transform_0, window_bounds = array<i64: 4, 4, 128>}, {pipeline_mode = #tpu.pipeline_mode<synchronous>, transform_indices = @transform_1, window_bounds = array<i64: 4, 4, 1>}, {pipeline_mode = #tpu.pipeline_mode<synchronous>, transform_indices = @transform_2, window_bounds = array<i64: 4, 4, 1>}, {pipeline_mode = #tpu.pipeline_mode<synchronous>, transform_indices = @transform_3, window_bounds = array<i64: 4, 8, 4>}, {pipeline_mode = #tpu.pipeline_mode<synchronous>, transform_indices = @transform_4, window_bounds = array<i64: 8, 1>}, {transform_indices = @transform_5, window_bounds = array<i64: 8, 128>}]} {
    %c0 = arith.constant 0 : index
    %c0_0 = arith.constant 0 : index
    %c0_1 = arith.constant 0 : index
    %0 = vector.load %arg1[%c0, %c0_0, %c0_1] : memref<4x4x128xf32, #tpu.memory_space<vmem>>, vector<1x4x128xf32>
    %1 = vector.shape_cast %0 : vector<1x4x128xf32> to vector<4x128xf32>
    %c1 = arith.constant 1 : index
    %c0_2 = arith.constant 0 : index
    %c0_3 = arith.constant 0 : index
    %2 = vector.load %arg1[%c1, %c0_2, %c0_3] : memref<4x4x128xf32, #tpu.memory_space<vmem>>, vector<1x4x128xf32>
    %3 = vector.shape_cast %2 : vector<1x4x128xf32> to vector<4x128xf32>
    %c2 = arith.constant 2 : index
    %c0_4 = arith.constant 0 : index
    %c0_5 = arith.constant 0 : index
    %4 = vector.load %arg1[%c2, %c0_4, %c0_5] : memref<4x4x128xf32, #tpu.memory_space<vmem>>, vector<1x4x128xf32>
    %5 = vector.shape_cast %4 : vector<1x4x128xf32> to vector<4x128xf32>
    %c3 = arith.constant 3 : index
    %c0_6 = arith.constant 0 : index
    %c0_7 = arith.constant 0 : index
    %6 = vector.load %arg1[%c3, %c0_6, %c0_7] : memref<4x4x128xf32, #tpu.memory_space<vmem>>, vector<1x4x128xf32>
    %7 = vector.shape_cast %6 : vector<1x4x128xf32> to vector<4x128xf32>
    %8 = arith.addf %1, %3 : vector<4x128xf32>
    %9 = arith.addf %5, %7 : vector<4x128xf32>
    %10 = arith.subf %1, %3 : vector<4x128xf32>
    %11 = arith.subf %5, %7 : vector<4x128xf32>
    %12 = arith.addf %8, %9 : vector<4x128xf32>
    %13 = arith.subf %8, %9 : vector<4x128xf32>
    %14 = arith.addf %10, %11 : vector<4x128xf32>
    %15 = arith.subf %10, %11 : vector<4x128xf32>
    %c0_8 = arith.constant 0 : index
    %c0_9 = arith.constant 0 : index
    %c0_10 = arith.constant 0 : index
    %16 = vector.load %arg2[%c0_8, %c0_9, %c0_10] : memref<4x4x1xf32, #tpu.memory_space<vmem>>, vector<1x4x1xf32>
    %17 = vector.shape_cast %16 : vector<1x4x1xf32> to vector<4x1xf32>
    %18 = vector.broadcast %17 : vector<4x1xf32> to vector<4x128xf32>
    %19 = arith.mulf %12, %18 : vector<4x128xf32>
    %c0_11 = arith.constant 0 : index
    %c0_12 = arith.constant 0 : index
    %c0_13 = arith.constant 0 : index
    %20 = vector.load %arg3[%c0_11, %c0_12, %c0_13] : memref<4x4x1xf32, #tpu.memory_space<vmem>>, vector<1x4x1xf32>
    %21 = vector.shape_cast %20 : vector<1x4x1xf32> to vector<4x1xf32>
    %22 = vector.broadcast %21 : vector<4x1xf32> to vector<4x128xf32>
    %23 = arith.addf %19, %22 : vector<4x128xf32>
    %cst = arith.constant 0.000000e+00 : f32
    %24 = vector.broadcast %cst : f32 to vector<4x128xf32>
    %25 = arith.maximumf %23, %24 : vector<4x128xf32>
    %c0_14 = arith.constant 0 : index
    %c0_15 = arith.constant 0 : index
    %c0_16 = arith.constant 0 : index
    %26 = vector.load %arg4[%c0_14, %c0_15, %c0_16] : memref<4x8x4xf32, #tpu.memory_space<vmem>>, vector<1x8x4xf32>
    %27 = vector.shape_cast %26 : vector<1x8x4xf32> to vector<8x4xf32>
    %cst_17 = arith.constant dense<0.000000e+00> : vector<8x128xf32>
    %28 = tpu.matmul %27, %25, %cst_17 {dimension_numbers = #tpu.dot_dimension_numbers<[1], [0], [0], [1], [0, 0, 1, 1], [], []>} : vector<8x4xf32>, vector<4x128xf32>, vector<8x128xf32> -> vector<8x128xf32>
    %c1_18 = arith.constant 1 : index
    %c0_19 = arith.constant 0 : index
    %c0_20 = arith.constant 0 : index
    %29 = vector.load %arg2[%c1_18, %c0_19, %c0_20] : memref<4x4x1xf32, #tpu.memory_space<vmem>>, vector<1x4x1xf32>
    %30 = vector.shape_cast %29 : vector<1x4x1xf32> to vector<4x1xf32>
    %31 = vector.broadcast %30 : vector<4x1xf32> to vector<4x128xf32>
    %32 = arith.mulf %13, %31 : vector<4x128xf32>
    %c1_21 = arith.constant 1 : index
    %c0_22 = arith.constant 0 : index
    %c0_23 = arith.constant 0 : index
    %33 = vector.load %arg3[%c1_21, %c0_22, %c0_23] : memref<4x4x1xf32, #tpu.memory_space<vmem>>, vector<1x4x1xf32>
    %34 = vector.shape_cast %33 : vector<1x4x1xf32> to vector<4x1xf32>
    %35 = vector.broadcast %34 : vector<4x1xf32> to vector<4x128xf32>
    %36 = arith.addf %32, %35 : vector<4x128xf32>
    %cst_24 = arith.constant 0.000000e+00 : f32
    %37 = vector.broadcast %cst_24 : f32 to vector<4x128xf32>
    %38 = arith.maximumf %36, %37 : vector<4x128xf32>
    %c1_25 = arith.constant 1 : index
    %c0_26 = arith.constant 0 : index
    %c0_27 = arith.constant 0 : index
    %39 = vector.load %arg4[%c1_25, %c0_26, %c0_27] : memref<4x8x4xf32, #tpu.memory_space<vmem>>, vector<1x8x4xf32>
    %40 = vector.shape_cast %39 : vector<1x8x4xf32> to vector<8x4xf32>
    %cst_28 = arith.constant dense<0.000000e+00> : vector<8x128xf32>
    %41 = tpu.matmul %40, %38, %cst_28 {dimension_numbers = #tpu.dot_dimension_numbers<[1], [0], [0], [1], [0, 0, 1, 1], [], []>} : vector<8x4xf32>, vector<4x128xf32>, vector<8x128xf32> -> vector<8x128xf32>
    %42 = arith.addf %28, %41 : vector<8x128xf32>
    %c2_29 = arith.constant 2 : index
    %c0_30 = arith.constant 0 : index
    %c0_31 = arith.constant 0 : index
    %43 = vector.load %arg2[%c2_29, %c0_30, %c0_31] : memref<4x4x1xf32, #tpu.memory_space<vmem>>, vector<1x4x1xf32>
    %44 = vector.shape_cast %43 : vector<1x4x1xf32> to vector<4x1xf32>
    %45 = vector.broadcast %44 : vector<4x1xf32> to vector<4x128xf32>
    %46 = arith.mulf %14, %45 : vector<4x128xf32>
    %c2_32 = arith.constant 2 : index
    %c0_33 = arith.constant 0 : index
    %c0_34 = arith.constant 0 : index
    %47 = vector.load %arg3[%c2_32, %c0_33, %c0_34] : memref<4x4x1xf32, #tpu.memory_space<vmem>>, vector<1x4x1xf32>
    %48 = vector.shape_cast %47 : vector<1x4x1xf32> to vector<4x1xf32>
    %49 = vector.broadcast %48 : vector<4x1xf32> to vector<4x128xf32>
    %50 = arith.addf %46, %49 : vector<4x128xf32>
    %cst_35 = arith.constant 0.000000e+00 : f32
    %51 = vector.broadcast %cst_35 : f32 to vector<4x128xf32>
    %52 = arith.maximumf %50, %51 : vector<4x128xf32>
    %c2_36 = arith.constant 2 : index
    %c0_37 = arith.constant 0 : index
    %c0_38 = arith.constant 0 : index
    %53 = vector.load %arg4[%c2_36, %c0_37, %c0_38] : memref<4x8x4xf32, #tpu.memory_space<vmem>>, vector<1x8x4xf32>
    %54 = vector.shape_cast %53 : vector<1x8x4xf32> to vector<8x4xf32>
    %cst_39 = arith.constant dense<0.000000e+00> : vector<8x128xf32>
    %55 = tpu.matmul %54, %52, %cst_39 {dimension_numbers = #tpu.dot_dimension_numbers<[1], [0], [0], [1], [0, 0, 1, 1], [], []>} : vector<8x4xf32>, vector<4x128xf32>, vector<8x128xf32> -> vector<8x128xf32>
    %56 = arith.addf %42, %55 : vector<8x128xf32>
    %c3_40 = arith.constant 3 : index
    %c0_41 = arith.constant 0 : index
    %c0_42 = arith.constant 0 : index
    %57 = vector.load %arg2[%c3_40, %c0_41, %c0_42] : memref<4x4x1xf32, #tpu.memory_space<vmem>>, vector<1x4x1xf32>
    %58 = vector.shape_cast %57 : vector<1x4x1xf32> to vector<4x1xf32>
    %59 = vector.broadcast %58 : vector<4x1xf32> to vector<4x128xf32>
    %60 = arith.mulf %15, %59 : vector<4x128xf32>
    %c3_43 = arith.constant 3 : index
    %c0_44 = arith.constant 0 : index
    %c0_45 = arith.constant 0 : index
    %61 = vector.load %arg3[%c3_43, %c0_44, %c0_45] : memref<4x4x1xf32, #tpu.memory_space<vmem>>, vector<1x4x1xf32>
    %62 = vector.shape_cast %61 : vector<1x4x1xf32> to vector<4x1xf32>
    %63 = vector.broadcast %62 : vector<4x1xf32> to vector<4x128xf32>
    %64 = arith.addf %60, %63 : vector<4x128xf32>
    %cst_46 = arith.constant 0.000000e+00 : f32
    %65 = vector.broadcast %cst_46 : f32 to vector<4x128xf32>
    %66 = arith.maximumf %64, %65 : vector<4x128xf32>
    %c3_47 = arith.constant 3 : index
    %c0_48 = arith.constant 0 : index
    %c0_49 = arith.constant 0 : index
    %67 = vector.load %arg4[%c3_47, %c0_48, %c0_49] : memref<4x8x4xf32, #tpu.memory_space<vmem>>, vector<1x8x4xf32>
    %68 = vector.shape_cast %67 : vector<1x8x4xf32> to vector<8x4xf32>
    %cst_50 = arith.constant dense<0.000000e+00> : vector<8x128xf32>
    %69 = tpu.matmul %68, %66, %cst_50 {dimension_numbers = #tpu.dot_dimension_numbers<[1], [0], [0], [1], [0, 0, 1, 1], [], []>} : vector<8x4xf32>, vector<4x128xf32>, vector<8x128xf32> -> vector<8x128xf32>
    %70 = arith.addf %56, %69 : vector<8x128xf32>
    %c0_51 = arith.constant 0 : index
    %c0_52 = arith.constant 0 : index
    %71 = vector.load %arg5[%c0_51, %c0_52] : memref<8x1xf32, #tpu.memory_space<vmem>>, vector<8x1xf32>
    %72 = vector.broadcast %71 : vector<8x1xf32> to vector<8x128xf32>
    %73 = arith.addf %70, %72 : vector<8x128xf32>
    %c0_53 = arith.constant 0 : index
    %c0_54 = arith.constant 0 : index
    %74 = vector.load %arg6[%c0_53, %c0_54] : memref<8x128xf32, #tpu.memory_space<vmem>>, vector<8x128xf32>
    tpu.vector_store %arg6[%c0_53, %c0_54], %73 {strides = array<i32>} : memref<8x128xf32, #tpu.memory_space<vmem>>, vector<8x128xf32>,
    return
  }
  func.func @transform_0(%arg0: i32) -> (i32, i32, i32) {
    %c0_i32 = arith.constant 0 : i32
    %c0_i32_0 = arith.constant 0 : i32
    %c0_i32_1 = arith.constant 0 : i32
    return %c0_i32, %c0_i32_0, %arg0 : i32, i32, i32
  }
  func.func @transform_1(%arg0: i32) -> (i32, i32, i32) {
    %c0_i32 = arith.constant 0 : i32
    %c0_i32_0 = arith.constant 0 : i32
    %c0_i32_1 = arith.constant 0 : i32
    %c0_i32_2 = arith.constant 0 : i32
    return %c0_i32, %c0_i32_0, %c0_i32_1 : i32, i32, i32
  }
  func.func @transform_2(%arg0: i32) -> (i32, i32, i32) {
    %c0_i32 = arith.constant 0 : i32
    %c0_i32_0 = arith.constant 0 : i32
    %c0_i32_1 = arith.constant 0 : i32
    %c0_i32_2 = arith.constant 0 : i32
    return %c0_i32, %c0_i32_0, %c0_i32_1 : i32, i32, i32
  }
  func.func @transform_3(%arg0: i32) -> (i32, i32, i32) {
    %c0_i32 = arith.constant 0 : i32
    %c0_i32_0 = arith.constant 0 : i32
    %c0_i32_1 = arith.constant 0 : i32
    %c0_i32_2 = arith.constant 0 : i32
    return %c0_i32, %c0_i32_0, %c0_i32_1 : i32, i32, i32
  }
  func.func @transform_4(%arg0: i32) -> (i32, i32) {
    %c0_i32 = arith.constant 0 : i32
    %c0_i32_0 = arith.constant 0 : i32
    %c0_i32_1 = arith.constant 0 : i32
    return %c0_i32, %c0_i32_0 : i32, i32
  }
  func.func @transform_5(%arg0: i32) -> (i32, i32) {
    %c0_i32 = arith.constant 0 : i32
    %c0_i32_0 = arith.constant 0 : i32
    return %c0_i32, %arg0 : i32, i32
  }
}

</mosaic_0001>

<bundles_post_ra>
// kernel: down_wt_forward.1
= control target key start
LH: loop header
LB: loop body
LE: loop exit
PB: predicated region body
PF: predicated region fallthrough
CT: control target
= control target key end

     0   :  { %v481_v0 = vmov 0   ;;  %v482_v7 = vmov 0.0   ;;  %vm483_vm0 = vmmov 0   ;;  %vm74_vm1 = vcmask 1043456   ;;  %s580_s2 = inlined_call_operand.vmem [shape: f32[4,4,1], index: 2, kind: input, shape index: {}]   ;;  %s581_s1 = inlined_call_operand.vmem [shape: f32[4,4,1], index: 1, kind: input, shape index: {}]   ;;  %s582_s4 = inlined_call_operand.vmem [shape: f32[8,1], index: 4, kind: input, shape index: {}]   ;;  %s583_s0 = inlined_call_operand.vmem [shape: f32[4,4,128], index: 0, kind: input, shape index: {}]   ;;  %s584_s3 = inlined_call_operand.vmem [shape: f32[4,8,4], index: 3, kind: input, shape index: {}]   ;;  %s585_s5 = inlined_call_operand.vmem [shape: f32[8,128], index: 5, kind: output, shape index: {}]  }
   0x1   :  { %480 = vset.pattern.permute.xlu1 %v481_v0  ;;  %479 = vset.pattern.permute.xlu0 %v481_v0  ;;  %v432_v1 = vld [vmem:[%s580_s2 + $0x4] sm:$0xf]  ;;  %v42_v3 = vld [vmem:[%s580_s2] sm:$0xf]  ;;  %v439_v5 = vld [vmem:[%s580_s2 + $0x8] sm:$0xf] }
   0x2   :  { %v431_v2 = vld [vmem:[%s581_s1 + $0x4] sm:$0xf]  ;;  %63 = vperm.xlu1 %480, %v432_v1   ;;  %v35_v4 = vld [vmem:[%s581_s1] sm:$0xf]  ;;  %v438_v6 = vld [vmem:[%s581_s1 + $0x8] sm:$0xf]  ;;  %456 = vmatprep.subr.mxu0 %v482_v7 }
   0x3   :  { %55 = vperm.xlu0 %479, %v431_v2   ;;  %461 = vmatprep.subr.mxu1 %v482_v7  ;;  %v444_v8 = vld [vmem:[%s580_s2 + $0xc] sm:$0xf]  ;;  %v416_v10 = vld [vmem:[%s582_s4] sm:$0xff]  ;;  %v429_v13 = vld [vmem:[%s583_s0 + $0x8] sm:$0xf]  ;;  %vm70_vm2 = vcmask 31744  }
   0x4   :  { %v443_v9 = vld [vmem:[%s581_s1 + $0xc] sm:$0xf]  ;;  %458 = vmatprep.mubr.msk.f32.mxu0 %vm483_vm0, %v482_v7  ;;  %463 = vmatprep.mubr.msk.f32.mxu1 %vm483_vm0, %v482_v7  ;;  %v20_v11 = vld [vmem:[%s583_s0] sm:$0xf]  ;;  %v428_v12 = vld [vmem:[%s583_s0 + $0x4] sm:$0xf] }
   0x5   :  { %v430_v14 = vld [vmem:[%s583_s0 + $0xc] sm:$0xf]  ;;  %v27_v15 = vadd.f32 %v428_v12, %v20_v11  ;;  %v29_v22 = vsub.f32 %v20_v11, %v428_v12  ;;  %v50_v37 = vld [vmem:[%s584_s3] sm:$0xff]  ;;  %v440_v42 = vld [vmem:[%s584_s3 + $0x10] sm:$0xff] }
   0x6   :  { %45 = vperm.xlu1 %480, %v42_v3   ;;  %v28_v16 = vadd.f32 %v430_v14, %v429_v13  ;;  %v30_v23 = vsub.f32 %v429_v13, %v430_v14  ;;  %v433_v30 = vld [vmem:[%s584_s3 + $0x8] sm:$0xff]  ;;  %v445_v46 = vld [vmem:[%s584_s3 + $0x18] sm:$0xff] }
   0x7   :  { %38 = vperm.xlu0 %479, %v35_v4  }
   0x8   :  { %v32_v17 = vsub.f32 %v27_v15, %v28_v16  ;;  %v31_v21 = vadd.f32 %v28_v16, %v27_v15  ;;  %v33_v29 = vadd.f32 %v30_v23, %v29_v22  ;;  %v34_v36 = vsub.f32 %v29_v22, %v30_v23 }
   0xa   :  { %236 = vperm.xlu1 %480, %v439_v5  }
   0xb   :  { %228 = vperm.xlu0 %479, %v438_v6  }
   0xe   :  { %332 = vperm.xlu1 %480, %v444_v8  }
   0xf   :  { %324 = vperm.xlu0 %479, %v443_v9  }
  0x13   :  { %419 = vperm.xlu0 %479, %v416_v10  }
  0x81   :  { %v64_v18 = vpop.permute.xlu1 %63 }
  0x82   :  { %v56_v19 = vpop.permute.xlu0 %55 }
  0x83   :  { %v58_v20 = vmul.f32 %v56_v19, %v32_v17 }
  0x85   :  { %v66_v24 = vadd.f32 %v64_v18, %v58_v20  ;;  %v46_v25 = vpop.permute.xlu1 %45 }
  0x86   :  { %v39_v26 = vpop.permute.xlu0 %38 }
  0x87   :  { %v67_v27 = vmax.f32 %v66_v24, 0.0  ;;  %v41_v28 = vmul.f32 %v39_v26, %v31_v21 }
  0x89   :  { %v48_v31 = vadd.f32 %v46_v25, %v41_v28  ;;  %457 = vmatpush3.msk.msra.mxu0 %vm74_vm1, %v67_v27  ;;  %v237_v32 = vpop.permute.xlu1 %236 }
  0x8a   :  { %v229_v33 = vpop.permute.xlu0 %228  ;;  %459 = vmatmul.mubr.msk.f32.vlgmr.msra.gmra.mrb[0].mxu0 %vm70_vm2, %v433_v30  ;;  %466 = vmatprep.subr.mxu0 %v482_v7 }
  0x8b   :  { %v49_v34 = vmax.f32 %v48_v31, 0.0  ;;  %v231_v35 = vmul.f32 %v229_v33, %v33_v29  ;;  %468 = vmatprep.mubr.msk.f32.mxu0 %vm483_vm0, %v482_v7 }
  0x8d   :  { %v239_v38 = vadd.f32 %v237_v32, %v231_v35  ;;  %462 = vmatpush3.msk.msra.mxu1 %vm74_vm1, %v49_v34  ;;  %v333_v43 = vpop.permute.xlu1 %332 }
  0x8e   :  { %v325_v39 = vpop.permute.xlu0 %324  ;;  %464 = vmatmul.mubr.msk.f32.vlgmr.msra.gmra.mrb[0].mxu1 %vm70_vm2, %v50_v37  ;;  %471 = vmatprep.subr.mxu1 %v482_v7 }
  0x8f   :  { %v240_v40 = vmax.f32 %v239_v38, 0.0  ;;  %v327_v41 = vmul.f32 %v325_v39, %v34_v36  ;;  %473 = vmatprep.mubr.msk.f32.mxu1 %vm483_vm0, %v482_v7 }
  0x91   :  { %v335_v44 = vadd.f32 %v333_v43, %v327_v41  ;;  %467 = vmatpush3.msk.msra.mxu0 %vm74_vm1, %v240_v40 }
  0x92   :  { %469 = vmatmul.mubr.msk.f32.vlgmr.msra.gmra.mrb[2].mxu0 %vm70_vm2, %v440_v42  ;;  %v420_v58 = vpop.permute.xlu0 %419 }
  0x93   :  { %v336_v45 = vmax.f32 %v335_v44, 0.0 }
  0x95   :  { %472 = vmatpush3.msk.msra.mxu1 %vm74_vm1, %v336_v45 }
  0x96   :  { %474 = vmatmul.mubr.msk.f32.vlgmr.msra.gmra.mrb[2].mxu1 %vm70_vm2, %v445_v46 }
 0x15d   :  { %v144_v47 = vpop.f32.mrb[0].mxu0 }
 0x15e   :  { %v460_v48 = vpop.f32.mrb[1].mxu0 }
 0x161   :  { %v220_v49 = vpop.f32.mrb[0].mxu1 }
 0x162   :  { %v221_v50 = vadd.f32 %v220_v49, %v144_v47  ;;  %v465_v51 = vpop.f32.mrb[1].mxu1 }
 0x165   :  { %v315_v52 = vpop.f32.mrb[2].mxu0 }
 0x166   :  { %v319_v53 = vadd.f32 %v315_v52, %v221_v50  ;;  %v470_v54 = vpop.f32.mrb[3].mxu0 }
 0x169   :  { %v411_v55 = vpop.f32.mrb[2].mxu1 }
 0x16a   :  { %v415_v56 = vadd.f32 %v411_v55, %v319_v53  ;;  %v475_v57 = vpop.f32.mrb[3].mxu1 }
 0x16c   :  { %v422_v59 = vadd.f32 %v420_v58, %v415_v56 }
 0x16e   :  { %423 = vst [vmem:[%s585_s5] sm:$0xff] %v422_v59 }

</bundles_post_ra>
